<compile_context>
chip_gen: v5e
topology: v5e:2x2
jax: 0.10.0
libtpu: 0.0.40
codegen_flags: <defaults>
</compile_context>

<pallas_src>
import functools

import jax
import jax.numpy as jnp
from jax.experimental import pallas as pl
from jax.experimental.pallas import tpu as pltpu

# Deterministic Sobel weights (cross-correlation convention, as in F.conv*).
_SOBEL_X = ((-1.0, 0.0, 1.0),
            (-2.0, 0.0, 2.0),
            (-1.0, 0.0, 1.0))

_VMEM_BUDGET_BYTES = 16 * 1024 * 1024   # target for double-buffered blocks
_VMEM_LIMIT_BYTES = 48 * 1024 * 1024    # safe on v5e/v6e (128 MiB) and v7x (64 MiB)


def _sobel_separable_kernel(mask_ref, x_ref, o_ref, *, w_stride):
    # x_ref: (CB, N) flattened H*W planes; mask_ref: (4, N) f32 0/1; o_ref: (CB, 2, N)
    x = x_ref[...].astype(jnp.float32)
    m = mask_ref[...]
    m_left, m_right, m_up, m_down = m[0:1], m[1:2], m[2:3], m[3:4]

    # Single-axis (lane) rolls with zero boundaries via precomputed 0/1 masks.
    def left(a):     # a[h, w+1]
        return jnp.roll(a, -1, axis=-1) * m_left

    def right(a):    # a[h, w-1]
        return jnp.roll(a, 1, axis=-1) * m_right

    def up(a):       # a[h-1, w]
        return jnp.roll(a, w_stride, axis=-1) * m_up

    def down(a):     # a[h+1, w]
        return jnp.roll(a, -w_stride, axis=-1) * m_down

    x2 = x + x
    s = up(x) + x2 + down(x)       # vertical   [1, 2, 1] smooth
    t = right(x) + x2 + left(x)    # horizontal [1, 2, 1] smooth
    gx = left(s) - right(s)        # horizontal [-1, 0, 1] derivative (sobel_x)
    gy = down(t) - up(t)           # vertical   [-1, 0, 1] derivative (sobel_y)

    o_ref[:, 0, :] = gx.astype(o_ref.dtype)
    o_ref[:, 1, :] = gy.astype(o_ref.dtype)


def _make_boundary_masks(H, W):
    """(4, H*W) float32 0/1 masks: [w+1 valid, w-1 valid, h-1 valid, h+1 valid]."""
    N = H * W
    p = jnp.arange(N, dtype=jnp.int32)
    col = p % W
    m_left = col != (W - 1)
    m_right = col != 0
    m_up = p >= W
    m_down = p < (N - W)
    return jnp.stack([m_left, m_right, m_up, m_down]).astype(jnp.float32)


def _choose_channel_block(BC, N, itemsize, budget_bytes):
    # Per-channel-row VMEM: double-buffered input (N) + output (2*N) blocks.
    per_row = 6 * N * itemsize
    if BC <= 8 or BC * per_row <= budget_bytes:
        return BC                              # full leading dim: always layout-legal
    cb = max(8, int(budget_bytes // per_row) // 8 * 8)   # multiple of 8 sublanes
    # TODO(synk): planes so large that even cb=8 exceeds the VMEM budget would need
    # row-tiling with a 1-row halo; not implemented here.
    return int(min(cb, BC))


@jax.jit
def spatial_gradient(x):
    """Pallas implementation of SpatialGradient.forward: (B,C,H,W) -> (B,C,2,H,W)."""
    B, C, H, W = x.shape
    BC, N = B * C, H * W
    itemsize = jnp.dtype(x.dtype).itemsize

    cb = _choose_channel_block(BC, N, itemsize, _VMEM_BUDGET_BYTES)
    grid = (pl.cdiv(BC, cb),)

    xf = x.reshape(BC, N)                    # free row-major reshape
    masks = _make_boundary_masks(H, W)

    kernel = functools.partial(_sobel_separable_kernel, w_stride=W)
    out = pl.pallas_call(
        kernel,
        out_shape=jax.ShapeDtypeStruct((BC, 2, N), x.dtype),
        grid=grid,
        in_specs=[
            pl.BlockSpec((4, N), lambda i: (0, 0)),     # boundary masks (same block)
            pl.BlockSpec((cb, N), lambda i: (i, 0)),    # channel-batched planes
        ],
        out_specs=pl.BlockSpec((cb, 2, N), lambda i: (i, 0, 0)),
        compiler_params=pltpu.CompilerParams(
            dimension_semantics=("parallel",),
            vmem_limit_bytes=_VMEM_LIMIT_BYTES,
        ),
    )(masks, xf)
    return out.reshape(B, C, 2, H, W)


def _reference(x):
    # Pure-JAX reference replicating the PyTorch F.conv3d semantics for verification.
    kx = jnp.array(_SOBEL_X, jnp.float32)
    ky = kx.T
    B, C, H, W = x.shape
    xp = jnp.pad(x.astype(jnp.float32), ((0, 0), (0, 0), (1, 1), (1, 1)))
    gx = sum(kx[i, j] * xp[:, :, i:i + H, j:j + W]
             for i in range(3) for j in range(3))
    gy = sum(ky[i, j] * xp[:, :, i:i + H, j:j + W]
             for i in range(3) for j in range(3))
    return jnp.stack([gx, gy], axis=2).astype(x.dtype)


if __name__ == "__main__":
    key = jax.random.PRNGKey(0)
    x = jax.random.normal(key, (2, 4, 16, 16), dtype=jnp.float32)

    out = spatial_gradient(x)
    out = jax.block_until_ready(out)

    ref = _reference(x)
    assert out.shape == (2, 4, 2, 16, 16), out.shape
    assert jnp.allclose(out, ref, atol=1e-5, rtol=1e-5), "mismatch vs reference"

    print("KERNEL_OK")
</pallas_src>

<mosaic_0001>
module attributes {stable_mosaic.version = 11 : i64} {
  func.func @_sobel_separable_kernel(%arg0: i32, %arg1: memref<4x256xf32, #tpu.memory_space<vmem>>, %arg2: memref<8x256xf32, #tpu.memory_space<vmem>>, %arg3: memref<8x2x256xf32, #tpu.memory_space<vmem>>) attributes {dimension_semantics = [#tpu.dimension_semantics<parallel>], iteration_bounds = array<i64: 1>, scalar_prefetch = 0 : i64, scratch_operands = 0 : i64, tpu.core_type = #tpu.core_type<tc>, window_params = [{pipeline_mode = #tpu.pipeline_mode<synchronous>, transform_indices = @transform_0, window_bounds = array<i64: 4, 256>}, {transform_indices = @transform_1, window_bounds = array<i64: 8, 256>}, {transform_indices = @transform_2, window_bounds = array<i64: 8, 2, 256>}]} {
    %c0 = arith.constant 0 : index
    %c0_0 = arith.constant 0 : index
    %0 = vector.load %arg2[%c0, %c0_0] : memref<8x256xf32, #tpu.memory_space<vmem>>, vector<8x256xf32>
    %c0_1 = arith.constant 0 : index
    %c0_2 = arith.constant 0 : index
    %1 = vector.load %arg1[%c0_1, %c0_2] : memref<4x256xf32, #tpu.memory_space<vmem>>, vector<4x256xf32>
    %2 = vector.extract_strided_slice %1 {offsets = [0, 0], sizes = [1, 256], strides = [1, 1]} : vector<4x256xf32> to vector<1x256xf32>
    %3 = vector.extract_strided_slice %1 {offsets = [1, 0], sizes = [1, 256], strides = [1, 1]} : vector<4x256xf32> to vector<1x256xf32>
    %4 = vector.extract_strided_slice %1 {offsets = [2, 0], sizes = [1, 256], strides = [1, 1]} : vector<4x256xf32> to vector<1x256xf32>
    %5 = vector.extract_strided_slice %1 {offsets = [3, 0], sizes = [1, 256], strides = [1, 1]} : vector<4x256xf32> to vector<1x256xf32>
    %6 = arith.addf %0, %0 : vector<8x256xf32>
    %7 = vector.extract_strided_slice %0 {offsets = [0, 240], sizes = [8, 16], strides = [1, 1]} : vector<8x256xf32> to vector<8x16xf32>
    %8 = vector.extract_strided_slice %0 {offsets = [0, 0], sizes = [8, 240], strides = [1, 1]} : vector<8x256xf32> to vector<8x240xf32>
    %9 = tpu.concatenate %7, %8 in 1 : vector<8x16xf32>, vector<8x240xf32> -> vector<8x256xf32>
    %10 = vector.broadcast %4 : vector<1x256xf32> to vector<8x256xf32>
    %11 = arith.mulf %9, %10 : vector<8x256xf32>
    %12 = arith.addf %11, %6 : vector<8x256xf32>
    %13 = vector.extract_strided_slice %0 {offsets = [0, 16], sizes = [8, 240], strides = [1, 1]} : vector<8x256xf32> to vector<8x240xf32>
    %14 = vector.extract_strided_slice %0 {offsets = [0, 0], sizes = [8, 16], strides = [1, 1]} : vector<8x256xf32> to vector<8x16xf32>
    %15 = tpu.concatenate %13, %14 in 1 : vector<8x240xf32>, vector<8x16xf32> -> vector<8x256xf32>
    %16 = vector.broadcast %5 : vector<1x256xf32> to vector<8x256xf32>
    %17 = arith.mulf %15, %16 : vector<8x256xf32>
    %18 = arith.addf %12, %17 : vector<8x256xf32>
    %19 = vector.extract_strided_slice %0 {offsets = [0, 255], sizes = [8, 1], strides = [1, 1]} : vector<8x256xf32> to vector<8x1xf32>
    %20 = vector.extract_strided_slice %0 {offsets = [0, 0], sizes = [8, 255], strides = [1, 1]} : vector<8x256xf32> to vector<8x255xf32>
    %21 = tpu.concatenate %19, %20 in 1 : vector<8x1xf32>, vector<8x255xf32> -> vector<8x256xf32>
    %22 = vector.broadcast %3 : vector<1x256xf32> to vector<8x256xf32>
    %23 = arith.mulf %21, %22 : vector<8x256xf32>
    %24 = arith.addf %23, %6 : vector<8x256xf32>
    %25 = vector.extract_strided_slice %0 {offsets = [0, 1], sizes = [8, 255], strides = [1, 1]} : vector<8x256xf32> to vector<8x255xf32>
    %26 = vector.extract_strided_slice %0 {offsets = [0, 0], sizes = [8, 1], strides = [1, 1]} : vector<8x256xf32> to vector<8x1xf32>
    %27 = tpu.concatenate %25, %26 in 1 : vector<8x255xf32>, vector<8x1xf32> -> vector<8x256xf32>
    %28 = vector.broadcast %2 : vector<1x256xf32> to vector<8x256xf32>
    %29 = arith.mulf %27, %28 : vector<8x256xf32>
    %30 = arith.addf %24, %29 : vector<8x256xf32>
    %31 = vector.extract_strided_slice %18 {offsets = [0, 1], sizes = [8, 255], strides = [1, 1]} : vector<8x256xf32> to vector<8x255xf32>
    %32 = vector.extract_strided_slice %18 {offsets = [0, 0], sizes = [8, 1], strides = [1, 1]} : vector<8x256xf32> to vector<8x1xf32>
    %33 = tpu.concatenate %31, %32 in 1 : vector<8x255xf32>, vector<8x1xf32> -> vector<8x256xf32>
    %34 = vector.broadcast %2 : vector<1x256xf32> to vector<8x256xf32>
    %35 = arith.mulf %33, %34 : vector<8x256xf32>
    %36 = vector.extract_strided_slice %18 {offsets = [0, 255], sizes = [8, 1], strides = [1, 1]} : vector<8x256xf32> to vector<8x1xf32>
    %37 = vector.extract_strided_slice %18 {offsets = [0, 0], sizes = [8, 255], strides = [1, 1]} : vector<8x256xf32> to vector<8x255xf32>
    %38 = tpu.concatenate %36, %37 in 1 : vector<8x1xf32>, vector<8x255xf32> -> vector<8x256xf32>
    %39 = vector.broadcast %3 : vector<1x256xf32> to vector<8x256xf32>
    %40 = arith.mulf %38, %39 : vector<8x256xf32>
    %41 = arith.subf %35, %40 : vector<8x256xf32>
    %42 = vector.extract_strided_slice %30 {offsets = [0, 16], sizes = [8, 240], strides = [1, 1]} : vector<8x256xf32> to vector<8x240xf32>
    %43 = vector.extract_strided_slice %30 {offsets = [0, 0], sizes = [8, 16], strides = [1, 1]} : vector<8x256xf32> to vector<8x16xf32>
    %44 = tpu.concatenate %42, %43 in 1 : vector<8x240xf32>, vector<8x16xf32> -> vector<8x256xf32>
    %45 = vector.broadcast %5 : vector<1x256xf32> to vector<8x256xf32>
    %46 = arith.mulf %44, %45 : vector<8x256xf32>
    %47 = vector.extract_strided_slice %30 {offsets = [0, 240], sizes = [8, 16], strides = [1, 1]} : vector<8x256xf32> to vector<8x16xf32>
    %48 = vector.extract_strided_slice %30 {offsets = [0, 0], sizes = [8, 240], strides = [1, 1]} : vector<8x256xf32> to vector<8x240xf32>
    %49 = tpu.concatenate %47, %48 in 1 : vector<8x16xf32>, vector<8x240xf32> -> vector<8x256xf32>
    %50 = vector.broadcast %4 : vector<1x256xf32> to vector<8x256xf32>
    %51 = arith.mulf %49, %50 : vector<8x256xf32>
    %52 = arith.subf %46, %51 : vector<8x256xf32>
    %c0_3 = arith.constant 0 : index
    %c0_4 = arith.constant 0 : index
    %c0_5 = arith.constant 0 : index
    %53 = vector.load %arg3[%c0_3, %c0_4, %c0_5] : memref<8x2x256xf32, #tpu.memory_space<vmem>>, vector<8x1x256xf32>
    %54 = vector.shape_cast %53 : vector<8x1x256xf32> to vector<8x256xf32>
    %55 = vector.shape_cast %41 : vector<8x256xf32> to vector<8x1x256xf32>
    tpu.vector_store %arg3[%c0_3, %c0_4, %c0_5], %55 {strides = array<i32>} : memref<8x2x256xf32, #tpu.memory_space<vmem>>, vector<8x1x256xf32>,
    %c0_6 = arith.constant 0 : index
    %c1 = arith.constant 1 : index
    %c0_7 = arith.constant 0 : index
    %56 = vector.load %arg3[%c0_6, %c1, %c0_7] : memref<8x2x256xf32, #tpu.memory_space<vmem>>, vector<8x1x256xf32>
    %57 = vector.shape_cast %56 : vector<8x1x256xf32> to vector<8x256xf32>
    %58 = vector.shape_cast %52 : vector<8x256xf32> to vector<8x1x256xf32>
    tpu.vector_store %arg3[%c0_6, %c1, %c0_7], %58 {strides = array<i32>} : memref<8x2x256xf32, #tpu.memory_space<vmem>>, vector<8x1x256xf32>,
    return
  }
  func.func @transform_0(%arg0: i32) -> (i32, i32) {
    %c0_i32 = arith.constant 0 : i32
    %c0_i32_0 = arith.constant 0 : i32
    %c0_i32_1 = arith.constant 0 : i32
    return %c0_i32, %c0_i32_0 : i32, i32
  }
  func.func @transform_1(%arg0: i32) -> (i32, i32) {
    %c0_i32 = arith.constant 0 : i32
    %c0_i32_0 = arith.constant 0 : i32
    return %arg0, %c0_i32 : i32, i32
  }
  func.func @transform_2(%arg0: i32) -> (i32, i32, i32) {
    %c0_i32 = arith.constant 0 : i32
    %c0_i32_0 = arith.constant 0 : i32
    %c0_i32_1 = arith.constant 0 : i32
    return %arg0, %c0_i32, %c0_i32_0 : i32, i32, i32
  }
}

</mosaic_0001>

<bundles_post_ra>
// kernel: spatial_gradient.1
= control target key start
LH: loop header
LB: loop body
LE: loop exit
PB: predicated region body
PF: predicated region fallthrough
CT: control target
= control target key end

     0   :  { %s269_s11 = smov 1   ;;  %s270_s12 = smov 16   ;;  %vm43_vm0 = vcmask 916480   ;;  %vm23_vm1 = vcmask 130048   ;;  %vm64_vm2 = vcmask 7168   ;;  %vm83_vm3 = vcmask 1039360   ;;  %s445_s1 = inlined_call_operand.vmem [shape: f32[8,256], index: 1, kind: input, shape index: {}]   ;;  %s446_s0 = inlined_call_operand.vmem [shape: f32[4,256], index: 0, kind: input, shape index: {}]   ;;  %s447_s2 = inlined_call_operand.vmem [shape: f32[8,2,256], index: 2, kind: output, shape index: {}]  }
   0x1   :  { %v12_v0 = vld [vmem:[%s445_s1 + $0x8] sm:$0xff]  ;;  %v11_v1 = vld [vmem:[%s445_s1] sm:$0xff]  ;;  %s271_s15 = smov 112   ;;  %s272_s16 = smov 127   ;;  %v185_v56 = vlaneseq  ;;  %vm154_vm4 = vcmask 1040384   ;;  %vm156_vm5 = vcmask 1041409  }
   0x2   :  { %59 = vrot.lane.b32.xlu1 %v12_v0, %s269_s11  ;;  %17 = vrot.lane.b32.xlu0 %v12_v0, %s270_s12  ;;  %v13_v5 = vld [vmem:[%s446_s0] sm:$0xff]  ;;  %v15_v13 = vadd.f32 %v12_v0, %v12_v0  ;;  %v14_v19 = vadd.f32 %v11_v1, %v11_v1  ;;  %vm159_vm6 = vcmask 1042434   ;;  %vm162_vm7 = vcmask 1043459  }
   0x3   :  { %39 = vrot.lane.b32.xlu2 %v11_v1, %s271_s15  ;;  %v29_v6 = vperm.slane %v13_v5, 2  ;;  %v30_v7 = vperm.slane %v13_v5, 6  ;;  %v49_v8 = vperm.slane %v13_v5, 3  ;;  %v50_v9 = vperm.slane %v13_v5, 7 }
   0x4   :  { %v69_v14 = vperm.slane %v13_v5, 1  ;;  %v70_v15 = vperm.slane %v13_v5, 5  ;;  %v89_v27 = vperm.slane %v13_v5, 0  ;;  %v90_v28 = vperm.slane %v13_v5, 4 }
   0x5   :  { %v305_v11 = vperm.slane %v29_v6, 2  ;;  %v307_v12 = vperm.slane %v30_v7, 2  ;;  %v309_v16 = vperm.slane %v49_v8, 3  ;;  %v311_v17 = vperm.slane %v50_v9, 3 }
   0x6   :  { %v73_v29 = vperm.slane %v69_v14, 1  ;;  %v74_v30 = vperm.slane %v70_v15, 1  ;;  %v93_v37 = vperm.slane %v89_v27, 0  ;;  %v94_v38 = vperm.slane %v90_v28, 0 }
   0x7   :  { %vm165_vm8 = vcmask 1044484   ;;  %vm337_vm9 = vcmp.lt.s32.totalorder %v185_v56, 256  ;;  %vm168_vm10 = vcmask 1045509   ;;  %vm171_vm11 = vcmask 1046534  }
   0x8   :  { %vm174_vm12 = vcmask 1046528  }
   0xa   :  { %62 = vrot.lane.b32.xlu1 %v11_v1, %s269_s11  ;;  %21 = vrot.lane.b32.xlu0 %v11_v1, %s270_s12 }
   0xb   :  { %41 = vrot.lane.b32.xlu2 %v12_v0, %s271_s15 }
  0x12   :  { %81 = vrot.lane.b32.xlu1 %v12_v0, %s272_s16  ;;  %79 = vrot.lane.b32.xlu0 %v11_v1, %s272_s16 }
  0x5d   :  { %v40_v2 = vpop.permute.xlu2 %39 }
  0x65   :  { %v42_v10 = vpop.permute.xlu2 %41 }
  0x66   :  { %v44_v21 = vsel %vm43_vm0, %v40_v2, %v42_v10  ;;  %v48_v22 = vsel %vm43_vm0, %v42_v10, %v40_v2 }
  0x67   :  { %v55_v31 = vmul.f32 %v309_v16, %v44_v21  ;;  %v56_v32 = vmul.f32 %v311_v17, %v48_v22 }
  0x74   :  { %v60_v3 = vpop.permute.xlu1 %59  ;;  %v18_v4 = vpop.permute.xlu0 %17 }
  0x7c   :  { %v63_v18 = vpop.permute.xlu1 %62  ;;  %v22_v20 = vpop.permute.xlu0 %21 }
  0x7d   :  { %v24_v23 = vsel %vm23_vm1, %v22_v20, %v18_v4  ;;  %v27_v24 = vsel %vm23_vm1, %v18_v4, %v22_v20  ;;  %v65_v35 = vsel %vm64_vm2, %v63_v18, %v60_v3  ;;  %v68_v36 = vsel %vm64_vm2, %v60_v3, %v63_v18 }
  0x7e   :  { %v35_v25 = vmul.f32 %v305_v11, %v27_v24  ;;  %v36_v26 = vmul.f32 %v307_v12, %v24_v23  ;;  %v75_v41 = vmul.f32 %v73_v29, %v68_v36  ;;  %v76_v42 = vmul.f32 %v74_v30, %v65_v35 }
  0x80   :  { %v37_v33 = vadd.f32 %v35_v25, %v14_v19  ;;  %v38_v34 = vadd.f32 %v36_v26, %v15_v13  ;;  %v77_v49 = vadd.f32 %v75_v41, %v14_v19  ;;  %v78_v50 = vadd.f32 %v76_v42, %v15_v13 }
  0x82   :  { %v58_v39 = vadd.f32 %v56_v32, %v38_v34  ;;  %v57_v40 = vadd.f32 %v55_v31, %v37_v33 }
  0x84   :  { %v82_v43 = vpop.permute.xlu1 %81  ;;  %v80_v44 = vpop.permute.xlu0 %79  ;;  %112 = vrot.lane.b32.xlu1 %v58_v39, %s269_s11  ;;  %103 = vrot.lane.b32.xlu0 %v58_v39, %s272_s16 }
  0x85   :  { %v84_v45 = vsel %vm83_vm3, %v80_v44, %v82_v43  ;;  %v88_v46 = vsel %vm83_vm3, %v82_v43, %v80_v44  ;;  %101 = vrot.lane.b32.xlu2 %v57_v40, %s272_s16 }
  0x86   :  { %v95_v47 = vmul.f32 %v93_v37, %v84_v45  ;;  %v96_v48 = vmul.f32 %v94_v38, %v88_v46 }
  0x88   :  { %v98_v51 = vadd.f32 %v96_v48, %v78_v50  ;;  %v97_v52 = vadd.f32 %v95_v47, %v77_v49 }
  0x8c   :  { %129 = vrot.lane.b32.xlu1 %v98_v51, %s271_s15  ;;  %127 = vrot.lane.b32.xlu0 %v97_v52, %s271_s15 }
  0x8d   :  { %115 = vrot.lane.b32.xlu2 %v57_v40, %s269_s11 }
  0x94   :  { %141 = vrot.lane.b32.xlu0 %v97_v52, %s270_s12 }
  0x95   :  { %138 = vrot.lane.b32.xlu2 %v98_v51, %s270_s12 }
  0xdf   :  { %v102_v53 = vpop.permute.xlu2 %101 }
  0xe7   :  { %v116_v54 = vpop.permute.xlu2 %115 }
  0xef   :  { %v139_v28 = vpop.permute.xlu2 %138 }
  0xf6   :  { %v113_v55 = vpop.permute.xlu1 %112  ;;  %v104_v57 = vpop.permute.xlu0 %103 }
  0xf7   :  { %v117_v58 = vsel %vm64_vm2, %v116_v54, %v113_v55  ;;  %v120_v59 = vsel %vm64_vm2, %v113_v55, %v116_v54  ;;  %v105_v60 = vsel %vm83_vm3, %v102_v53, %v104_v57  ;;  %v109_v61 = vsel %vm83_vm3, %v104_v57, %v102_v53 }
  0xf8   :  { %v121_v62 = vmul.f32 %v120_v59, %v73_v29  ;;  %v122_v63 = vmul.f32 %v117_v58, %v74_v30  ;;  %v110_v0 = vmul.f32 %v105_v60, %v93_v37  ;;  %v111_v1 = vmul.f32 %v109_v61, %v94_v38 }
  0xfa   :  { %v124_v2 = vsub.f32 %v111_v1, %v122_v63  ;;  %v123_v4 = vsub.f32 %v110_v0, %v121_v62 }
  0xfc   :  { %v153_v5 = vrot.slane %v124_v2, 7 }
  0xfe   :  { %v155_v6 = vsel %vm154_vm4, %v123_v4, %v153_v5  ;;  %v157_v7 = vsel %vm156_vm5, %v123_v4, %v153_v5  ;;  %v160_v8 = vsel %vm159_vm6, %v123_v4, %v153_v5  ;;  %v163_v9 = vsel %vm162_vm7, %v123_v4, %v153_v5  ;;  %v128_v10 = vpop.permute.xlu0 %127  ;;  %v130_v25 = vpop.permute.xlu1 %129 }
  0xff   :  { %v158_v13 = vrot.slane %v157_v7, 1  ;;  %v161_v14 = vrot.slane %v160_v8, 2  ;;  %v164_v15 = vrot.slane %v163_v9, 3  ;;  %v166_v18 = vsel %vm165_vm8, %v123_v4, %v153_v5  ;;  %189 = vst.msk [vmem:[%s447_s2] ss:$2 sm:$0x3] %vm337_vm9, %v155_v6 }
 0x100   :  { %v167_v19 = vrot.slane %v166_v18, 4  ;;  %v169_v20 = vsel %vm168_vm10, %v123_v4, %v153_v5  ;;  %v172_v21 = vsel %vm171_vm11, %v123_v4, %v153_v5  ;;  %v175_v22 = vsel %vm174_vm12, %v153_v5, %v123_v4 }
 0x101   :  { %v170_v23 = vrot.slane %v169_v20, 5  ;;  %250 = vst.msk [vmem:[%s447_s2 + $0x4] ss:$2 sm:$0x3] %vm337_vm9, %v158_v13  ;;  %v173_v24 = vrot.slane %v172_v21, 6  ;;  %v176_v26 = vrot.slane %v175_v22, 7  ;;  %v135_v27 = vsel %vm43_vm0, %v130_v25, %v128_v10 }
 0x102   :  { %251 = vst.msk [vmem:[%s447_s2 + $0x8] ss:$2 sm:$0x3] %vm337_vm9, %v161_v14  ;;  %v131_v30 = vsel %vm43_vm0, %v128_v10, %v130_v25  ;;  %v137_v33 = vmul.f32 %v135_v27, %v311_v17 }
 0x103   :  { %252 = vst.msk [vmem:[%s447_s2 + $0xc] ss:$2 sm:$0x3] %vm337_vm9, %v164_v15  ;;  %v136_v36 = vmul.f32 %v131_v30, %v309_v16 }
 0x104   :  { %253 = vst.msk [vmem:[%s447_s2 + $0x10] ss:$2 sm:$0x3] %vm337_vm9, %v167_v19 }
 0x105   :  { %254 = vst.msk [vmem:[%s447_s2 + $0x14] ss:$2 sm:$0x3] %vm337_vm9, %v170_v23 }
 0x106   :  { %255 = vst.msk [vmem:[%s447_s2 + $0x18] ss:$2 sm:$0x3] %vm337_vm9, %v173_v24  ;;  %v142_v29 = vpop.permute.xlu0 %141 }
 0x107   :  { %256 = vst.msk [vmem:[%s447_s2 + $0x1c] ss:$2 sm:$0x3] %vm337_vm9, %v176_v26  ;;  %v143_v31 = vsel %vm23_vm1, %v142_v29, %v139_v28  ;;  %v146_v32 = vsel %vm23_vm1, %v139_v28, %v142_v29 }
 0x108   :  { %v147_v34 = vmul.f32 %v146_v32, %v305_v11  ;;  %v148_v35 = vmul.f32 %v143_v31, %v307_v12 }
 0x10a   :  { %v150_v37 = vsub.f32 %v137_v33, %v148_v35  ;;  %v149_v38 = vsub.f32 %v136_v36, %v147_v34 }
 0x10c   :  { %v206_v39 = vrot.slane %v150_v37, 7 }
 0x10e   :  { %v207_v40 = vsel %vm154_vm4, %v149_v38, %v206_v39  ;;  %v208_v41 = vsel %vm156_vm5, %v149_v38, %v206_v39  ;;  %v210_v42 = vsel %vm159_vm6, %v149_v38, %v206_v39  ;;  %v212_v43 = vsel %vm162_vm7, %v149_v38, %v206_v39 }
 0x10f   :  { %v209_v44 = vrot.slane %v208_v41, 1  ;;  %v211_v45 = vrot.slane %v210_v42, 2  ;;  %v213_v17 = vrot.slane %v212_v43, 3  ;;  %v214_v11 = vsel %vm165_vm8, %v149_v38, %v206_v39  ;;  %257 = vst.msk [vmem:[%s447_s2 + $0x1] ss:$2 sm:$0x3] %vm337_vm9, %v207_v40 }
 0x110   :  { %v215_v12 = vrot.slane %v214_v11, 4  ;;  %v216_v16 = vsel %vm168_vm10, %v149_v38, %v206_v39  ;;  %v218_v46 = vsel %vm171_vm11, %v149_v38, %v206_v39  ;;  %v220_v47 = vsel %vm174_vm12, %v206_v39, %v149_v38 }
 0x111   :  { %v217_v48 = vrot.slane %v216_v16, 5  ;;  %258 = vst.msk [vmem:[%s447_s2 + $0x5] ss:$2 sm:$0x3] %vm337_vm9, %v209_v44  ;;  %v219_v49 = vrot.slane %v218_v46, 6  ;;  %v221_v50 = vrot.slane %v220_v47, 7 }
 0x112   :  { %259 = vst.msk [vmem:[%s447_s2 + $0x9] ss:$2 sm:$0x3] %vm337_vm9, %v211_v45 }
 0x113   :  { %260 = vst.msk [vmem:[%s447_s2 + $0xd] ss:$2 sm:$0x3] %vm337_vm9, %v213_v17 }
 0x114   :  { %261 = vst.msk [vmem:[%s447_s2 + $0x11] ss:$2 sm:$0x3] %vm337_vm9, %v215_v12 }
 0x115   :  { %262 = vst.msk [vmem:[%s447_s2 + $0x15] ss:$2 sm:$0x3] %vm337_vm9, %v217_v48 }
 0x116   :  { %263 = vst.msk [vmem:[%s447_s2 + $0x19] ss:$2 sm:$0x3] %vm337_vm9, %v219_v49 }
 0x117   :  { %264 = vst.msk [vmem:[%s447_s2 + $0x1d] ss:$2 sm:$0x3] %vm337_vm9, %v221_v50 }

</bundles_post_ra>
